<compile_context>
chip_gen: v6e
topology: v6e:2x2x1
jax: 0.10.0
libtpu: 0.0.40
codegen_flags: <defaults>
</compile_context>

<pallas_src>
import functools

import jax
import jax.numpy as jnp
from jax import lax
from jax.experimental import pallas as pl
from jax.experimental.pallas import tpu as pltpu


def _downsample_kernel(xcol_ref, w1_ref, b1_ref, w2_ref, b2_ref, mask_ref, o_ref, *, Wh):
    """Per-grid-step fused kernel (transposed layout: channels on sublanes, spatial on lanes).

    xcol_ref : (4, 9*Cin, L)   phase-split im2col; phase p=(a,c) holds the 3x3 patches of the
                               conv outputs landing at pool offset (a,c); lanes = (b, h', w')
    w1_ref   : (Cout, 9*Cin)   3x3 conv weights (rows = output channel, cols = k*Cin+ci)
    b1_ref   : (Cout, 1)       conv bias
    w2_ref   : (Cout, 9*Cout)  fused depthwise*pointwise weights, cols = (tap k, channel ci)
    b2_ref   : (Cout, 1)       fused bias  wp @ bd + bp
    mask_ref : (9, L)          0/1 border-validity masks for the depthwise taps
    o_ref    : (Cout, L)       lane-dense output slab (L is a multiple of 128)
    """
    # --- 3x3 conv (stride 1, pad 1): one small MXU matmul per pool phase ---
    w1 = w1_ref[...]
    y00 = jnp.dot(w1, xcol_ref[0], preferred_element_type=jnp.float32)
    y01 = jnp.dot(w1, xcol_ref[1], preferred_element_type=jnp.float32)
    y10 = jnp.dot(w1, xcol_ref[2], preferred_element_type=jnp.float32)
    y11 = jnp.dot(w1, xcol_ref[3], preferred_element_type=jnp.float32)

    # --- 2x2 max-pool (stride 2) == elementwise max over the 4 phases (zero lane movement);
    #     the per-channel conv bias commutes with max and is added once, then ReLU ---
    pooled = jnp.maximum(jnp.maximum(y00, y01), jnp.maximum(y10, y11))
    pooled = jnp.maximum(pooled + b1_ref[...], 0.0)                 # (Cout, L) f32

    # --- depthwise 3x3 taps: constant lane shifts of the flattened (h'*Wh + w') spatial
    #     axis with precomputed 0/1 border masks.  Roll wrap-around (incl. across batch
    #     segments inside the block) only lands on masked-out lanes, so it is exact. ---
    taps = []
    for dy in range(3):
        for dx in range(3):
            k = dy * 3 + dx
            off = (dy - 1) * Wh + (dx - 1)
            # static shift -> lowers to static lane slices + concat (XLU work, VPU-free)
            src = pooled if off == 0 else jnp.roll(pooled, -off, axis=1)
            taps.append(src if k == 4 else src * mask_ref[k:k + 1, :])

    # --- depthwise-3x3 * pointwise-1x1 fused into ONE MXU matmul (K = 9*Cout), exactly
    #     folded bias (wp @ bd + bp), final ReLU, single lane-dense writeback ---
    tap_mat = jnp.concatenate(taps, axis=0)                         # (9*Cout, L)
    y = jnp.dot(w2_ref[...], tap_mat.astype(w2_ref.dtype),
                preferred_element_type=jnp.float32)
    o_ref[...] = jnp.maximum(y + b2_ref[...], 0.0)


def _pick_batch_tile(n, sh):
    # Prefer >= 2 grid steps (pipelined input DMA; both TensorCores on v7x) while keeping
    # the per-step lane width (Bt*Sh) a multiple of 128 (unmasked vst / dense DMA).
    for bt in range(n // 2, 0, -1):
        if n % bt == 0 and (bt * sh) % 128 == 0:
            return bt
    return n


def downsample_layer_forward(x_nchw, params, *, batch_tile=None, use_bf16_matmul=False):
    """NCHW in / NCHW out wrapper; im2col + weight packing are layout plumbing in XLA."""
    N, Cin, H, W = x_nchw.shape
    Cout = params["b1"].shape[0]
    assert H % 2 == 0 and W % 2 == 0, "MaxPool2d(2,2) expects even spatial dims"
    Hh, Wh = H // 2, W // 2
    Sh = Hh * Wh

    Bt = _pick_batch_tile(N, Sh) if batch_tile is None else batch_tile
    assert N % Bt == 0, "batch_tile must divide the batch size"
    steps = N // Bt
    L = Bt * Sh

    # Optional bf16 MXU operands for v6e/v7x (accumulation and the VPU max/mask path stay
    # f32).  Off by default to keep the tight f32 tolerance against the reference.
    mm_dtype = jnp.bfloat16 if use_bf16_matmul else jnp.float32

    # Phase-split im2col, transposed packing:
    #   x_col[p, k*Cin+ci, n*Sh + h'*Wh + w'] = xpad[n, ci, 2h'+a+dy, 2w'+c+dx]
    # with p = a*2+c (pool phase) and k = dy*3+dx (conv tap).
    xp = jnp.pad(x_nchw, ((0, 0), (0, 0), (1, 1), (1, 1)))
    taps = [xp[:, :, dy:dy + H, dx:dx + W] for dy in range(3) for dx in range(3)]
    ts = jnp.stack(taps, axis=0).reshape(9, N, Cin, Hh, 2, Wh, 2)
    x_col = jnp.transpose(ts, (4, 6, 0, 2, 1, 3, 5)).reshape(4, 9 * Cin, N * Sh)
    x_col = x_col.astype(mm_dtype)
    # TODO(synk): at realistic H/W/C, build these 9 taps in-kernel from a 1-pixel-halo input
    #             DMA (pl.ANY + pltpu.make_async_copy) instead of materializing the 9x
    #             im2col stream through HBM (this op becomes HBM-bound at scale).

    w1 = params["w1"].astype(mm_dtype)                      # (Cout, 9*Cin)
    w2 = params["w2"].astype(mm_dtype)                      # (Cout, 9*Cout)
    b1 = params["b1"].reshape(Cout, 1).astype(jnp.float32)
    b2 = params["b2"].reshape(Cout, 1).astype(jnp.float32)

    # 0/1 depthwise border masks (one row per tap), tiled to the batch-tile lane width.
    hh = jnp.arange(Sh, dtype=jnp.int32) // Wh
    ww = jnp.arange(Sh, dtype=jnp.int32) % Wh
    rows = []
    for dy in range(3):
        for dx in range(3):
            rows.append((hh + dy - 1 >= 0) & (hh + dy - 1 < Hh)
                        & (ww + dx - 1 >= 0) & (ww + dx - 1 < Wh))
    dw_mask = jnp.tile(jnp.stack(rows, 0).astype(jnp.float32), (1, Bt))   # (9, L)

    # Per-step VMEM @ (Bt=2, H=W=16, Cin=4, Cout=8), f32: double-buffered x_col block
    # (2 * 4*36*128*4B ~ 144 KiB) + output (2 * 4 KiB) + weights/masks (< 10 KiB) -- far
    # below the 32 MiB scoped default and v7x's 64 MiB physical VMEM.  When scaling H/W/C,
    # keep 2x the x_col block well under ~48 MiB (tile the pooled-spatial lane axis instead
    # of growing Bt) and set vmem_limit_bytes explicitly in CompilerParams.
    out_flat = pl.pallas_call(
        functools.partial(_downsample_kernel, Wh=Wh),
        out_shape=jax.ShapeDtypeStruct((Cout, N * Sh), jnp.float32),
        grid_spec=pltpu.PrefetchScalarGridSpec(
            num_scalar_prefetch=0,
            grid=(steps,),
            in_specs=[
                pl.BlockSpec((4, 9 * Cin, L), lambda n: (0, 0, n)),
                pl.BlockSpec((Cout, 9 * Cin), lambda n: (0, 0)),
                pl.BlockSpec((Cout, 1), lambda n: (0, 0)),
                pl.BlockSpec((Cout, 9 * Cout), lambda n: (0, 0)),
                pl.BlockSpec((Cout, 1), lambda n: (0, 0)),
                pl.BlockSpec((9, L), lambda n: (0, 0)),
            ],
            out_specs=pl.BlockSpec((Cout, L), lambda n: (0, n)),
        ),
        compiler_params=pltpu.CompilerParams(
            dimension_semantics=("parallel",)),    # batch tiles are independent
    )(x_col, w1, b1, w2, b2, dw_mask)

    out = out_flat.reshape(Cout, N, Hh, Wh)
    return jnp.transpose(out, (1, 0, 2, 3))        # back to NCHW


def pack_params(w1_oihw, b1, wd_oihw, bd, wp_oihw, bp):
    """Repack PyTorch-shaped weights into kernel layouts (pure glue, runs in XLA).

    Fuses depthwise-3x3 * pointwise-1x1 into a single matmul and folds the depthwise bias:
        W2[co, k*Cout+ci] = wd[ci, dy, dx] * wp[co, ci],     b2 = wp @ bd + bp     (exact).
    """
    Cout, Cin = w1_oihw.shape[0], w1_oihw.shape[1]
    w1 = jnp.transpose(w1_oihw, (0, 2, 3, 1)).reshape(Cout, 9 * Cin)     # (co, k*Cin+ci)
    wd_flat = jnp.transpose(wd_oihw[:, 0], (1, 2, 0)).reshape(9, Cout)   # (k, ci)
    wp2d = wp_oihw[:, :, 0, 0]                                           # (co, ci)
    w2 = (wd_flat[:, :, None] * jnp.transpose(wp2d)[None, :, :]).reshape(9 * Cout, Cout)
    return dict(w1=w1, b1=b1, w2=jnp.transpose(w2), b2=wp2d @ bd + bp)


def ref_forward(x_nchw, w1_oihw, b1, wd_oihw, bd, wp_oihw, bp):
    """Pure-JAX reference mirroring the PyTorch forward (NCHW)."""
    Cout = w1_oihw.shape[0]
    dn = ("NCHW", "OIHW", "NCHW")
    hp = lax.Precision.HIGHEST
    y = lax.conv_general_dilated(x_nchw, w1_oihw, (1, 1), "SAME",
                                 dimension_numbers=dn, precision=hp)
    y = y + b1[None, :, None, None]
    y = lax.reduce_window(y, -jnp.inf, lax.max, (1, 1, 2, 2), (1, 1, 2, 2), "VALID")
    y = jnp.maximum(y, 0.0)
    y = lax.conv_general_dilated(y, wd_oihw, (1, 1), "SAME",
                                 dimension_numbers=dn,
                                 feature_group_count=Cout, precision=hp)
    y = y + bd[None, :, None, None]
    y = lax.conv_general_dilated(y, wp_oihw, (1, 1), "SAME",
                                 dimension_numbers=dn, precision=hp)
    y = y + bp[None, :, None, None]
    return jnp.maximum(y, 0.0)


if __name__ == "__main__":
    # N=4 so the default batch tile (Bt=2) gives 2 "parallel" grid steps with
    # 128-lane-aligned input/output blocks.
    N, Cin, Cout, H, W = 4, 4, 8, 16, 16

    key = jax.random.PRNGKey(0)
    kx, k1, k2, k3, k4, k5, k6 = jax.random.split(key, 7)
    x = jax.random.normal(kx, (N, Cin, H, W), jnp.float32)

    # deterministic synthetic parameters (PyTorch weight shapes)
    w1_oihw = 0.2 * jax.random.normal(k1, (Cout, Cin, 3, 3), jnp.float32)   # conv
    b1 = 0.1 * jax.random.normal(k2, (Cout,), jnp.float32)
    wd_oihw = 0.2 * jax.random.normal(k3, (Cout, 1, 3, 3), jnp.float32)     # depthwise
    bd = 0.1 * jax.random.normal(k4, (Cout,), jnp.float32)
    wp_oihw = 0.2 * jax.random.normal(k5, (Cout, Cout, 1, 1), jnp.float32)  # pointwise
    bp = 0.1 * jax.random.normal(k6, (Cout,), jnp.float32)

    params = pack_params(w1_oihw, b1, wd_oihw, bd, wp_oihw, bp)

    out = downsample_layer_forward(x, params)
    out = jax.block_until_ready(out)

    ref = ref_forward(x, w1_oihw, b1, wd_oihw, bd, wp_oihw, bp)
    assert out.shape == (N, Cout, H // 2, W // 2), out.shape
    max_err = float(jnp.max(jnp.abs(out - ref)))
    assert jnp.allclose(out, ref, atol=2e-3, rtol=2e-3), f"max_err={max_err}"

    print("KERNEL_OK")
</pallas_src>

<mosaic_0001>
module attributes {stable_mosaic.version = 11 : i64} {
  func.func @_downsample_kernel(%arg0: i32, %arg1: memref<4x36x128xf32, #tpu.memory_space<vmem>>, %arg2: memref<8x36xf32, #tpu.memory_space<vmem>>, %arg3: memref<8x1xf32, #tpu.memory_space<vmem>>, %arg4: memref<8x72xf32, #tpu.memory_space<vmem>>, %arg5: memref<8x1xf32, #tpu.memory_space<vmem>>, %arg6: memref<9x128xf32, #tpu.memory_space<vmem>>, %arg7: memref<8x128xf32, #tpu.memory_space<vmem>>) attributes {dimension_semantics = [#tpu.dimension_semantics<parallel>], iteration_bounds = array<i64: 2>, scalar_prefetch = 0 : i64, scratch_operands = 0 : i64, tpu.core_type = #tpu.core_type<tc>, window_params = [{transform_indices = @transform_0, window_bounds = array<i64: 4, 36, 128>}, {pipeline_mode = #tpu.pipeline_mode<synchronous>, transform_indices = @transform_1, window_bounds = array<i64: 8, 36>}, {pipeline_mode = #tpu.pipeline_mode<synchronous>, transform_indices = @transform_2, window_bounds = array<i64: 8, 1>}, {pipeline_mode = #tpu.pipeline_mode<synchronous>, transform_indices = @transform_3, window_bounds = array<i64: 8, 72>}, {pipeline_mode = #tpu.pipeline_mode<synchronous>, transform_indices = @transform_4, window_bounds = array<i64: 8, 1>}, {pipeline_mode = #tpu.pipeline_mode<synchronous>, transform_indices = @transform_5, window_bounds = array<i64: 9, 128>}, {transform_indices = @transform_6, window_bounds = array<i64: 8, 128>}]} {
    %c0 = arith.constant 0 : index
    %c0_0 = arith.constant 0 : index
    %0 = vector.load %arg2[%c0, %c0_0] : memref<8x36xf32, #tpu.memory_space<vmem>>, vector<8x36xf32>
    %c0_1 = arith.constant 0 : index
    %c0_2 = arith.constant 0 : index
    %c0_3 = arith.constant 0 : index
    %1 = vector.load %arg1[%c0_1, %c0_2, %c0_3] : memref<4x36x128xf32, #tpu.memory_space<vmem>>, vector<1x36x128xf32>
    %2 = vector.shape_cast %1 : vector<1x36x128xf32> to vector<36x128xf32>
    %cst = arith.constant dense<0.000000e+00> : vector<8x128xf32>
    %3 = tpu.matmul %0, %2, %cst {dimension_numbers = #tpu.dot_dimension_numbers<[1], [0], [0], [1], [0, 0, 1, 1], [], []>} : vector<8x36xf32>, vector<36x128xf32>, vector<8x128xf32> -> vector<8x128xf32>
    %c1 = arith.constant 1 : index
    %c0_4 = arith.constant 0 : index
    %c0_5 = arith.constant 0 : index
    %4 = vector.load %arg1[%c1, %c0_4, %c0_5] : memref<4x36x128xf32, #tpu.memory_space<vmem>>, vector<1x36x128xf32>
    %5 = vector.shape_cast %4 : vector<1x36x128xf32> to vector<36x128xf32>
    %cst_6 = arith.constant dense<0.000000e+00> : vector<8x128xf32>
    %6 = tpu.matmul %0, %5, %cst_6 {dimension_numbers = #tpu.dot_dimension_numbers<[1], [0], [0], [1], [0, 0, 1, 1], [], []>} : vector<8x36xf32>, vector<36x128xf32>, vector<8x128xf32> -> vector<8x128xf32>
    %c2 = arith.constant 2 : index
    %c0_7 = arith.constant 0 : index
    %c0_8 = arith.constant 0 : index
    %7 = vector.load %arg1[%c2, %c0_7, %c0_8] : memref<4x36x128xf32, #tpu.memory_space<vmem>>, vector<1x36x128xf32>
    %8 = vector.shape_cast %7 : vector<1x36x128xf32> to vector<36x128xf32>
    %cst_9 = arith.constant dense<0.000000e+00> : vector<8x128xf32>
    %9 = tpu.matmul %0, %8, %cst_9 {dimension_numbers = #tpu.dot_dimension_numbers<[1], [0], [0], [1], [0, 0, 1, 1], [], []>} : vector<8x36xf32>, vector<36x128xf32>, vector<8x128xf32> -> vector<8x128xf32>
    %c3 = arith.constant 3 : index
    %c0_10 = arith.constant 0 : index
    %c0_11 = arith.constant 0 : index
    %10 = vector.load %arg1[%c3, %c0_10, %c0_11] : memref<4x36x128xf32, #tpu.memory_space<vmem>>, vector<1x36x128xf32>
    %11 = vector.shape_cast %10 : vector<1x36x128xf32> to vector<36x128xf32>
    %cst_12 = arith.constant dense<0.000000e+00> : vector<8x128xf32>
    %12 = tpu.matmul %0, %11, %cst_12 {dimension_numbers = #tpu.dot_dimension_numbers<[1], [0], [0], [1], [0, 0, 1, 1], [], []>} : vector<8x36xf32>, vector<36x128xf32>, vector<8x128xf32> -> vector<8x128xf32>
    %13 = arith.maximumf %3, %6 : vector<8x128xf32>
    %14 = arith.maximumf %9, %12 : vector<8x128xf32>
    %15 = arith.maximumf %13, %14 : vector<8x128xf32>
    %c0_13 = arith.constant 0 : index
    %c0_14 = arith.constant 0 : index
    %16 = vector.load %arg3[%c0_13, %c0_14] : memref<8x1xf32, #tpu.memory_space<vmem>>, vector<8x1xf32>
    %17 = vector.broadcast %16 : vector<8x1xf32> to vector<8x128xf32>
    %18 = arith.addf %15, %17 : vector<8x128xf32>
    %cst_15 = arith.constant 0.000000e+00 : f32
    %19 = vector.broadcast %cst_15 : f32 to vector<8x128xf32>
    %20 = arith.maximumf %18, %19 : vector<8x128xf32>
    %21 = vector.extract_strided_slice %20 {offsets = [0, 119], sizes = [8, 9], strides = [1, 1]} : vector<8x128xf32> to vector<8x9xf32>
    %22 = vector.extract_strided_slice %20 {offsets = [0, 0], sizes = [8, 119], strides = [1, 1]} : vector<8x128xf32> to vector<8x119xf32>
    %23 = tpu.concatenate %21, %22 in 1 : vector<8x9xf32>, vector<8x119xf32> -> vector<8x128xf32>
    %c0_16 = arith.constant 0 : index
    %c0_17 = arith.constant 0 : index
    %24 = vector.load %arg6[%c0_16, %c0_17] : memref<9x128xf32, #tpu.memory_space<vmem>>, vector<1x128xf32>
    %25 = vector.broadcast %24 : vector<1x128xf32> to vector<8x128xf32>
    %26 = arith.mulf %23, %25 : vector<8x128xf32>
    %27 = vector.extract_strided_slice %20 {offsets = [0, 120], sizes = [8, 8], strides = [1, 1]} : vector<8x128xf32> to vector<8x8xf32>
    %28 = vector.extract_strided_slice %20 {offsets = [0, 0], sizes = [8, 120], strides = [1, 1]} : vector<8x128xf32> to vector<8x120xf32>
    %29 = tpu.concatenate %27, %28 in 1 : vector<8x8xf32>, vector<8x120xf32> -> vector<8x128xf32>
    %c1_18 = arith.constant 1 : index
    %c0_19 = arith.constant 0 : index
    %30 = vector.load %arg6[%c1_18, %c0_19] : memref<9x128xf32, #tpu.memory_space<vmem>>, vector<1x128xf32>
    %31 = vector.broadcast %30 : vector<1x128xf32> to vector<8x128xf32>
    %32 = arith.mulf %29, %31 : vector<8x128xf32>
    %33 = vector.extract_strided_slice %20 {offsets = [0, 121], sizes = [8, 7], strides = [1, 1]} : vector<8x128xf32> to vector<8x7xf32>
    %34 = vector.extract_strided_slice %20 {offsets = [0, 0], sizes = [8, 121], strides = [1, 1]} : vector<8x128xf32> to vector<8x121xf32>
    %35 = tpu.concatenate %33, %34 in 1 : vector<8x7xf32>, vector<8x121xf32> -> vector<8x128xf32>
    %c2_20 = arith.constant 2 : index
    %c0_21 = arith.constant 0 : index
    %36 = vector.load %arg6[%c2_20, %c0_21] : memref<9x128xf32, #tpu.memory_space<vmem>>, vector<1x128xf32>
    %37 = vector.broadcast %36 : vector<1x128xf32> to vector<8x128xf32>
    %38 = arith.mulf %35, %37 : vector<8x128xf32>
    %39 = vector.extract_strided_slice %20 {offsets = [0, 127], sizes = [8, 1], strides = [1, 1]} : vector<8x128xf32> to vector<8x1xf32>
    %40 = vector.extract_strided_slice %20 {offsets = [0, 0], sizes = [8, 127], strides = [1, 1]} : vector<8x128xf32> to vector<8x127xf32>
    %41 = tpu.concatenate %39, %40 in 1 : vector<8x1xf32>, vector<8x127xf32> -> vector<8x128xf32>
    %c3_22 = arith.constant 3 : index
    %c0_23 = arith.constant 0 : index
    %42 = vector.load %arg6[%c3_22, %c0_23] : memref<9x128xf32, #tpu.memory_space<vmem>>, vector<1x128xf32>
    %43 = vector.broadcast %42 : vector<1x128xf32> to vector<8x128xf32>
    %44 = arith.mulf %41, %43 : vector<8x128xf32>
    %45 = vector.extract_strided_slice %20 {offsets = [0, 1], sizes = [8, 127], strides = [1, 1]} : vector<8x128xf32> to vector<8x127xf32>
    %46 = vector.extract_strided_slice %20 {offsets = [0, 0], sizes = [8, 1], strides = [1, 1]} : vector<8x128xf32> to vector<8x1xf32>
    %47 = tpu.concatenate %45, %46 in 1 : vector<8x127xf32>, vector<8x1xf32> -> vector<8x128xf32>
    %c5 = arith.constant 5 : index
    %c0_24 = arith.constant 0 : index
    %48 = vector.load %arg6[%c5, %c0_24] : memref<9x128xf32, #tpu.memory_space<vmem>>, vector<1x128xf32>
    %49 = vector.broadcast %48 : vector<1x128xf32> to vector<8x128xf32>
    %50 = arith.mulf %47, %49 : vector<8x128xf32>
    %51 = vector.extract_strided_slice %20 {offsets = [0, 7], sizes = [8, 121], strides = [1, 1]} : vector<8x128xf32> to vector<8x121xf32>
    %52 = vector.extract_strided_slice %20 {offsets = [0, 0], sizes = [8, 7], strides = [1, 1]} : vector<8x128xf32> to vector<8x7xf32>
    %53 = tpu.concatenate %51, %52 in 1 : vector<8x121xf32>, vector<8x7xf32> -> vector<8x128xf32>
    %c6 = arith.constant 6 : index
    %c0_25 = arith.constant 0 : index
    %54 = vector.load %arg6[%c6, %c0_25] : memref<9x128xf32, #tpu.memory_space<vmem>>, vector<1x128xf32>
    %55 = vector.broadcast %54 : vector<1x128xf32> to vector<8x128xf32>
    %56 = arith.mulf %53, %55 : vector<8x128xf32>
    %57 = vector.extract_strided_slice %20 {offsets = [0, 8], sizes = [8, 120], strides = [1, 1]} : vector<8x128xf32> to vector<8x120xf32>
    %58 = vector.extract_strided_slice %20 {offsets = [0, 0], sizes = [8, 8], strides = [1, 1]} : vector<8x128xf32> to vector<8x8xf32>
    %59 = tpu.concatenate %57, %58 in 1 : vector<8x120xf32>, vector<8x8xf32> -> vector<8x128xf32>
    %c7 = arith.constant 7 : index
    %c0_26 = arith.constant 0 : index
    %60 = vector.load %arg6[%c7, %c0_26] : memref<9x128xf32, #tpu.memory_space<vmem>>, vector<1x128xf32>
    %61 = vector.broadcast %60 : vector<1x128xf32> to vector<8x128xf32>
    %62 = arith.mulf %59, %61 : vector<8x128xf32>
    %63 = vector.extract_strided_slice %20 {offsets = [0, 9], sizes = [8, 119], strides = [1, 1]} : vector<8x128xf32> to vector<8x119xf32>
    %64 = vector.extract_strided_slice %20 {offsets = [0, 0], sizes = [8, 9], strides = [1, 1]} : vector<8x128xf32> to vector<8x9xf32>
    %65 = tpu.concatenate %63, %64 in 1 : vector<8x119xf32>, vector<8x9xf32> -> vector<8x128xf32>
    %c8 = arith.constant 8 : index
    %c0_27 = arith.constant 0 : index
    %66 = vector.load %arg6[%c8, %c0_27] : memref<9x128xf32, #tpu.memory_space<vmem>>, vector<1x128xf32>
    %67 = vector.broadcast %66 : vector<1x128xf32> to vector<8x128xf32>
    %68 = arith.mulf %65, %67 : vector<8x128xf32>
    %69 = tpu.concatenate %26, %32, %38, %44, %20, %50, %56, %62, %68 in 0 : vector<8x128xf32>, vector<8x128xf32>, vector<8x128xf32>, vector<8x128xf32>, vector<8x128xf32>, vector<8x128xf32>, vector<8x128xf32>, vector<8x128xf32>, vector<8x128xf32> -> vector<72x128xf32>
    %c0_28 = arith.constant 0 : index
    %c0_29 = arith.constant 0 : index
    %70 = vector.load %arg4[%c0_28, %c0_29] : memref<8x72xf32, #tpu.memory_space<vmem>>, vector<8x72xf32>
    %cst_30 = arith.constant dense<0.000000e+00> : vector<8x128xf32>
    %71 = tpu.matmul %70, %69, %cst_30 {dimension_numbers = #tpu.dot_dimension_numbers<[1], [0], [0], [1], [0, 0, 1, 1], [], []>} : vector<8x72xf32>, vector<72x128xf32>, vector<8x128xf32> -> vector<8x128xf32>
    %c0_31 = arith.constant 0 : index
    %c0_32 = arith.constant 0 : index
    %72 = vector.load %arg5[%c0_31, %c0_32] : memref<8x1xf32, #tpu.memory_space<vmem>>, vector<8x1xf32>
    %73 = vector.broadcast %72 : vector<8x1xf32> to vector<8x128xf32>
    %74 = arith.addf %71, %73 : vector<8x128xf32>
    %cst_33 = arith.constant 0.000000e+00 : f32
    %75 = vector.broadcast %cst_33 : f32 to vector<8x128xf32>
    %76 = arith.maximumf %74, %75 : vector<8x128xf32>
    %c0_34 = arith.constant 0 : index
    %c0_35 = arith.constant 0 : index
    %77 = vector.load %arg7[%c0_34, %c0_35] : memref<8x128xf32, #tpu.memory_space<vmem>>, vector<8x128xf32>
    tpu.vector_store %arg7[%c0_34, %c0_35], %76 {strides = array<i32>} : memref<8x128xf32, #tpu.memory_space<vmem>>, vector<8x128xf32>,
    return
  }
  func.func @transform_0(%arg0: i32) -> (i32, i32, i32) {
    %c0_i32 = arith.constant 0 : i32
    %c0_i32_0 = arith.constant 0 : i32
    %c0_i32_1 = arith.constant 0 : i32
    return %c0_i32, %c0_i32_0, %arg0 : i32, i32, i32
  }
  func.func @transform_1(%arg0: i32) -> (i32, i32) {
    %c0_i32 = arith.constant 0 : i32
    %c0_i32_0 = arith.constant 0 : i32
    %c0_i32_1 = arith.constant 0 : i32
    return %c0_i32, %c0_i32_0 : i32, i32
  }
  func.func @transform_2(%arg0: i32) -> (i32, i32) {
    %c0_i32 = arith.constant 0 : i32
    %c0_i32_0 = arith.constant 0 : i32
    %c0_i32_1 = arith.constant 0 : i32
    return %c0_i32, %c0_i32_0 : i32, i32
  }
  func.func @transform_3(%arg0: i32) -> (i32, i32) {
    %c0_i32 = arith.constant 0 : i32
    %c0_i32_0 = arith.constant 0 : i32
    %c0_i32_1 = arith.constant 0 : i32
    return %c0_i32, %c0_i32_0 : i32, i32
  }
  func.func @transform_4(%arg0: i32) -> (i32, i32) {
    %c0_i32 = arith.constant 0 : i32
    %c0_i32_0 = arith.constant 0 : i32
    %c0_i32_1 = arith.constant 0 : i32
    return %c0_i32, %c0_i32_0 : i32, i32
  }
  func.func @transform_5(%arg0: i32) -> (i32, i32) {
    %c0_i32 = arith.constant 0 : i32
    %c0_i32_0 = arith.constant 0 : i32
    %c0_i32_1 = arith.constant 0 : i32
    return %c0_i32, %c0_i32_0 : i32, i32
  }
  func.func @transform_6(%arg0: i32) -> (i32, i32) {
    %c0_i32 = arith.constant 0 : i32
    %c0_i32_0 = arith.constant 0 : i32
    return %c0_i32, %arg0 : i32, i32
  }
}

</mosaic_0001>

<bundles_post_ra>
// kernel: tpu_custom_call.1
= control target key start
LH: loop header
LB: loop body
LE: loop exit
PB: predicated region body
PF: predicated region fallthrough
CT: control target
= control target key end

     0   :  { %11 = vsyncpa [#allocation4], 0  ;;  %s1486_s0 = inlined_call_operand.vmem [shape: f32[4,36,256], index: 0, kind: input, shape index: {}]   ;;  %s1487_s1 = inlined_call_operand.vmem [shape: f32[8,36], index: 1, kind: input, shape index: {}]   ;;  %s1488_s2 = inlined_call_operand.vmem [shape: f32[8,1], index: 2, kind: input, shape index: {}]   ;;  %s1489_s3 = inlined_call_operand.vmem [shape: f32[8,72], index: 3, kind: input, shape index: {}]   ;;  %s1490_s4 = inlined_call_operand.vmem [shape: f32[8,1], index: 4, kind: input, shape index: {}]   ;;  %s1491_s5 = inlined_call_operand.vmem [shape: f32[9,128], index: 5, kind: input, shape index: {}]   ;;  %s1492_s6 = inlined_call_operand.hbm [shape: f32[8,256], index: 6, kind: output, shape index: {}]  }
   0x1   :  { %13 = vsyncpa [#allocation4 + $0x1], 0  ;;  %s1240_s21 = smov 0   ;;  %s1242_s22 = smov 0  }
   0x2   :  { %s1244_s23 = smov 0   ;;  %s1246_s24 = smov 0  }
   0x3 LB: > { %s927_s25 = sadd.s32 4294967295, %s1191_s24   ;;  %s928_s26 = sadd.s32 4294967294, %s1191_s24   ;;  %s1191_s24 = sphi %s1246_s24, %s1500_s24   ;;  %s1187_s23 = sphi %s1244_s23, %s1499_s23   ;;  %s1183_s22 = sphi %s1242_s22, %s1498_s22   ;;  %s1179_s21 = sphi %s1240_s21, %s1497_s21  }
   0x4   : > { %s1263_s27 = sadd.s32 1, %s1191_s24   ;;  %s26_s28 = sadd.s32 1, %s1187_s23 }
   0x5   : > { %s23_s29 = ssub.s32 %s1191_s24, %s1263_s27  ;;  %p33_p0 = scmp.ne.s32.totalorder %s1187_s23, %s1183_s22 }
   0x6   : > { %p24_p1 = scmp.eq.s32.totalorder %s23_s29, 0  ;;  %p34_p2 = scmp.eq.s32.totalorder %s1191_s24, 0 }
   0x7   : > { %p168_p3 = scmp.eq.s32.totalorder %s927_s25, 1  ;;  %p173_p4 = scmp.ne.s32.totalorder %s1183_s22, %s1179_s21 }
   0x8   : > { %s1276_s30 = scalar_select %p24_p1, %s1187_s23, %s26_s28  }
   0x9   : > { %p35_p5 = por %p34_p2, %p33_p0  ;;  %p1278_p6 = por %p168_p3, %p33_p0 }
   0xa   : > { %p174_p7 = scmp.eq.s32.totalorder %s928_s26, 1  ;;  %p1493_p9 = scmp.ge.s32.totalorder %s1191_s24, 2 }
   0xc   : > { %p1282_p8 = por %p174_p7, %p173_p4  ;;  %205 = sbr.rel (%p1493_p9) target bundleno = 31 (0x1f), region = 36 }
  0x11   : > { %208 = sbr.rel (!%p35_p5) target bundleno = 31 (0x1f), region = 40  ;;  %s210_s9 = sand.u32 (%p35_p5), 1, %s1187_s23  }
  0x12   : > { %s931_s10 = sshll.u32 (%p35_p5), %s1191_s24, 3  ;;  %s1077_s11 = smul.u32 (%p35_p5), 160, %s210_s9 }
  0x13   : > { %s1294_s14 = scalar_lea.vmem (%p35_p5), %s1486_s0, %s931_s10 }
  0x14   : > { %v281_v0 = vld [vmem:[%s1294_s14] sm:$0xff] (%p35_p5)  ;;  %v283_v1 = vld [vmem:[%s1294_s14 + $0x10] sm:$0xff] (%p35_p5)  ;;  %s1302_s15 = scalar_lea.vmem (%p35_p5), [#allocation2], %s1077_s11 }
  0x15   : > { %v285_v2 = vld [vmem:[%s1294_s14 + $0x20] sm:$0xff] (%p35_p5)  ;;  %v287_v3 = vld [vmem:[%s1294_s14 + $0x30] sm:$0xff] (%p35_p5)  ;;  %282 = vst [vmem:[%s1302_s15] sm:$0xff] (%p35_p5), %v281_v0  ;;  %284 = vst [vmem:[%s1302_s15 + $0x8] sm:$0xff] (%p35_p5), %v283_v1 }
  0x16   : > { %v289_v4 = vld [vmem:[%s1294_s14 + $0x40] sm:$0xff]  ;;  %v291_v5 = vld [vmem:[%s1294_s14 + $0x50] sm:$0xff]  ;;  %286 = vst [vmem:[%s1302_s15 + $0x10] sm:$0xff] %v285_v2  ;;  %288 = vst [vmem:[%s1302_s15 + $0x18] sm:$0xff] %v287_v3 }
  0x17   : > { %290 = vst [vmem:[%s1302_s15 + $0x20] sm:$0xff] %v289_v4  ;;  %292 = vst [vmem:[%s1302_s15 + $0x28] sm:$0xff] %v291_v5  ;;  %v293_v6 = vld [vmem:[%s1294_s14 + $0x60] sm:$0xff]  ;;  %v295_v7 = vld [vmem:[%s1294_s14 + $0x70] sm:$0xff] }
  0x18   : > { %v297_v8 = vld [vmem:[%s1294_s14 + $0x80] sm:$0xff]  ;;  %294 = vst [vmem:[%s1302_s15 + $0x30] sm:$0xff] %v293_v6  ;;  %296 = vst [vmem:[%s1302_s15 + $0x38] sm:$0xff] %v295_v7  ;;  %v299_v9 = vld [vmem:[%s1294_s14 + $0x90] sm:$0xff] }
  0x19   : > { %298 = vst [vmem:[%s1302_s15 + $0x40] sm:$0xff] %v297_v8  ;;  %v301_v10 = vld [vmem:[%s1294_s14 + $0xa0] sm:$0xff]  ;;  %v303_v11 = vld [vmem:[%s1294_s14 + $0xb0] sm:$0xff]  ;;  %300 = vst [vmem:[%s1302_s15 + $0x48] sm:$0xff] %v299_v9 }
  0x1a   : > { %302 = vst [vmem:[%s1302_s15 + $0x50] sm:$0xff] %v301_v10  ;;  %304 = vst [vmem:[%s1302_s15 + $0x58] sm:$0xff] %v303_v11  ;;  %v305_v12 = vld [vmem:[%s1294_s14 + $0xc0] sm:$0xff]  ;;  %v307_v13 = vld [vmem:[%s1294_s14 + $0xd0] sm:$0xff] }
  0x1b   : > { %v309_v14 = vld [vmem:[%s1294_s14 + $0xe0] sm:$0xff]  ;;  %306 = vst [vmem:[%s1302_s15 + $0x60] sm:$0xff] %v305_v12  ;;  %308 = vst [vmem:[%s1302_s15 + $0x68] sm:$0xff] %v307_v13  ;;  %v311_v15 = vld [vmem:[%s1294_s14 + $0xf0] sm:$0xff] }
  0x1c   : > { %310 = vst [vmem:[%s1302_s15 + $0x70] sm:$0xff] %v309_v14  ;;  %v313_v16 = vld [vmem:[%s1294_s14 + $0x100] sm:$0xff]  ;;  %v315_v17 = vld [vmem:[%s1294_s14 + $0x110] sm:$0xff]  ;;  %312 = vst [vmem:[%s1302_s15 + $0x78] sm:$0xff] %v311_v15 }
  0x1d   : > { %314 = vst [vmem:[%s1302_s15 + $0x80] sm:$0xff] %v313_v16  ;;  %316 = vst [vmem:[%s1302_s15 + $0x88] sm:$0xff] %v315_v17  ;;  %v317_v18 = vld [vmem:[%s1294_s14 + $0x120] sm:$0xff]  ;;  %v319_v19 = vld [vmem:[%s1294_s14 + $0x130] sm:$0xff] }
  0x1e   : > { %318 = vst [vmem:[%s1302_s15 + $0x90] sm:$0xff] %v317_v18  ;;  %320 = vst [vmem:[%s1302_s15 + $0x98] sm:$0xff] %v319_v19 }
  0x1f PF: > { %p932_p10 = scmp.ge.s32.totalorder %s1191_s24, 1  ;;  %p325_p11 = scmp.lt.s32.totalorder %s1191_s24, 3 }
  0x21   : > { %p326_p12 = pnand %p932_p10, %p325_p11 }
  0x22   : > { %s1341_s16 = sand.u32 (!%p326_p12), 1, %s1183_s22   ;;  %s1196_s29 = smov (!%p326_p12), 120  }
  0x23   : > { %329 = sbr.rel (%p326_p12) target bundleno = 618 (0x26a), region = 78  ;;  %s1197_s9 = smov (!%p326_p12), 119  }
  0x24   : > { %s1078_s17 = smul.u32 (!%p326_p12), 160, %s1341_s16  ;;  %s1198_s10 = smov (!%p326_p12), 121  }
  0x25   : > { %s1199_s11 = smov (!%p326_p12), 127   ;;  %s1200_s12 = smov (!%p326_p12), 1  }
  0x26   : > { %s1353_s20 = scalar_lea.vmem (!%p326_p12), [#allocation2], %s1078_s17  ;;  %s1201_s13 = smov (!%p326_p12), 7  }
  0x27   : > { %s1202_s14 = smov (!%p326_p12), 8   ;;  %s1203_s15 = smov (!%p326_p12), 9  }
  0x28   : > { %v1193_v20 = vmov 0.0   ;;  %vm1194_vm0 = vmmov 0   ;;  %v685_v21 = vld [vmem:[%s1488_s2] sm:$0xff]  ;;  %vm371_vm1 = vcmask 1043456   ;;  %v1195_v22 = vmov 0   ;;  %v365_v24 = vld [vmem:[%s1353_s20 + $0x18] sm:$0xff] }
  0x29   : > { %1004 = vmatprep.subr.mxu1 %v1193_v20  ;;  %1014 = vmatprep.mubr.msk.f32.mxu1 %vm1194_vm0, %v1193_v20  ;;  %v366_v23 = vld [vmem:[%s1353_s20 + $0x20] sm:$0xf]  ;;  %v364_v25 = vld [vmem:[%s1353_s20 + $0x10] sm:$0xff]  ;;  %v946_v27 = vld [vmem:[%s1353_s20 + $0x68] sm:$0xff]  ;;  %vm367_vm2 = vcmask 293888   ;;  %vm773_vm3 = vcmask 588800  }
  0x2a   : > { %1030 = vmatprep.subr.mxu0 %v1193_v20  ;;  %1040 = vmatprep.mubr.msk.f32.mxu0 %vm1194_vm0, %v1193_v20  ;;  %v947_v26 = vld [vmem:[%s1353_s20 + $0x70] sm:$0xf]  ;;  %v363_v28 = vld [vmem:[%s1353_s20 + $0x8] sm:$0xff]  ;;  %v945_v29 = vld [vmem:[%s1353_s20 + $0x60] sm:$0xff]  ;;  %s1204_s18 = smov [#allocation3]  }
  0x2b   : > { %1129 = vset.pattern.permute.xlu0 %v1195_v22  ;;  %1130 = vset.pattern.permute.xlu1 %v1195_v22  ;;  %v362_v30 = vld [vmem:[%s1353_s20] sm:$0xff]  ;;  %v940_v32 = vld [vmem:[%s1353_s20 + $0x48] sm:$0xf]  ;;  %v944_v33 = vld [vmem:[%s1353_s20 + $0x58] sm:$0xff]  ;;  %s1135_s19 = sshll.u32 %s1204_s18, 4  ;;  %s1136_s19 = int_to_ptr.vmem [resolvable:$false] %s1135_s19 }
  0x2c   : > { %688 = vperm.xlu0 %1129, %v685_v21   ;;  %1005 = vmatpush3.msk.msra.mxu1 %vm371_vm1, %v366_v23  ;;  %v361_v31 = vld [vmem:[%s1487_s1] sm:$0xff]  ;;  %v943_v35 = vld [vmem:[%s1353_s20 + $0x50] sm:$0xff]  ;;  %v938_v36 = vld [vmem:[%s1353_s20 + $0x38] sm:$0xff] }
  0x2d   : > { %1006 = vmatprep.subr.mxu1 %v1193_v20  ;;  %1031 = vmatpush3.msk.msra.mxu0 %vm371_vm1, %v947_v26  ;;  %v939_v34 = vld [vmem:[%s1353_s20 + $0x40] sm:$0xff]  ;;  %v937_v37 = vld [vmem:[%s1353_s20 + $0x30] sm:$0xff]  ;;  %v936_v38 = vld [vmem:[%s1353_s20 + $0x28] sm:$0xff] }
  0x2e   : > { %1007 = vmatpush3.msra.mxu1 %v365_v24  ;;  %1032 = vmatprep.subr.mxu0 %v1193_v20  ;;  %v954_v39 = vld [vmem:[%s1353_s20 + $0x98] sm:$0xf]  ;;  %v953_v40 = vld [vmem:[%s1353_s20 + $0x90] sm:$0xff]  ;;  %v952_v41 = vld [vmem:[%s1353_s20 + $0x88] sm:$0xff] }
  0x2f   : > { %1008 = vmatprep.subr.mxu1 %v1193_v20  ;;  %1033 = vmatpush3.msra.mxu0 %v946_v27  ;;  %v951_v42 = vld [vmem:[%s1353_s20 + $0x80] sm:$0xff]  ;;  %v950_v43 = vld [vmem:[%s1353_s20 + $0x78] sm:$0xff]  ;;  %v964_v59 = vld [vmem:[%s1491_s5 + $0x8] ss:$0 sm:$0xff] }
  0x30   : > { %1009 = vmatpush3.msra.mxu1 %v364_v25  ;;  %1034 = vmatprep.subr.mxu0 %v1193_v20  ;;  %v767_v58 = vld [vmem:[%s1490_s4] sm:$0xff] }
  0x31   : > { %1010 = vmatprep.subr.mxu1 %v1193_v20  ;;  %1035 = vmatpush3.msra.mxu0 %v945_v29  ;;  %v963_v60 = vld [vmem:[%s1491_s5 + $0x7] ss:$0 sm:$0xff]  ;;  %v962_v0 = vld [vmem:[%s1491_s5 + $0x6] ss:$0 sm:$0xff]  ;;  %v961_v3 = vld [vmem:[%s1491_s5 + $0x5] ss:$0 sm:$0xff] }
  0x32   : > { %1011 = vmatpush3.msra.mxu1 %v363_v28  ;;  %1036 = vmatprep.subr.mxu0 %v1193_v20  ;;  %v960_v7 = vld [vmem:[%s1491_s5 + $0x3] ss:$0 sm:$0xff]  ;;  %v959_v10 = vld [vmem:[%s1491_s5 + $0x2] ss:$0 sm:$0xff]  ;;  %v958_v12 = vld [vmem:[%s1491_s5 + $0x1] ss:$0 sm:$0xff] }
  0x33   : > { %1012 = vmatprep.subr.mxu1 %v1193_v20  ;;  %1037 = vmatpush3.msra.mxu0 %v944_v33  ;;  %v957_v15 = vld [vmem:[%s1491_s5] ss:$0 sm:$0xff] }
  0x34   : > { %1013 = vmatpush3.msra.mxu1 %v362_v30  ;;  %1038 = vmatprep.subr.mxu0 %v1193_v20  ;;  %v766_v19 = vld [vmem:[%s1489_s3] sm:$0xff] }
  0x35   : > { %1015 = vmatmul.mubr.msk.f32.vlgmr.msra.gmra.mxu1 %vm367_vm2, %v361_v31  ;;  %1017 = vmatprep.subr.mxu1 %v1193_v20 }
  0x36   : > { %1018 = vmatpush3.msk.msra.mxu1 %vm371_vm1, %v940_v32  ;;  %1027 = vmatprep.mubr.msk.f32.mxu1 %vm1194_vm0, %v1193_v20 }
  0x37   : > { %1019 = vmatprep.subr.mxu1 %v1193_v20  ;;  %1039 = vmatpush3.msra.mxu0 %v943_v35 }
  0x38   : > { %1020 = vmatpush3.msra.mxu1 %v939_v34  ;;  %1041 = vmatmul.mubr.msk.f32.vlgmr.msra.gmra.mxu0 %vm367_vm2, %v361_v31 }
  0x39   : > { %1021 = vmatprep.subr.mxu1 %v1193_v20  ;;  %1056 = vmatprep.subr.mxu0 %v1193_v20 }
  0x3a   : > { %1022 = vmatpush3.msra.mxu1 %v938_v36  ;;  %1074 = vmatprep.mubr.msk.f32.mxu0 %vm1194_vm0, %v1193_v20 }
  0x3b   : > { %1023 = vmatprep.subr.mxu1 %v1193_v20 }
  0x3c   : > { %1024 = vmatpush3.msra.mxu1 %v937_v37 }
  0x3d   : > { %1025 = vmatprep.subr.mxu1 %v1193_v20 }
  0x3e   : > { %1026 = vmatpush3.msra.mxu1 %v936_v38 }
  0x3f   : > { %1028 = vmatmul.mubr.msk.f32.vlgmr.msra.gmra.mxu1 %vm367_vm2, %v361_v31  ;;  %1043 = vmatprep.subr.mxu1 %v1193_v20 }
  0x40   : > { %1044 = vmatpush3.msk.msra.mxu1 %vm371_vm1, %v954_v39  ;;  %1053 = vmatprep.mubr.msk.f32.mxu1 %vm1194_vm0, %v1193_v20 }
  0x41   : > { %1045 = vmatprep.subr.mxu1 %v1193_v20 }
  0x42   : > { %1046 = vmatpush3.msra.mxu1 %v953_v40 }
  0x43   : > { %1047 = vmatprep.subr.mxu1 %v1193_v20 }
  0x44   : > { %1048 = vmatpush3.msra.mxu1 %v952_v41 }
  0x45   : > { %1049 = vmatprep.subr.mxu1 %v1193_v20 }
  0x46   : > { %1050 = vmatpush3.msra.mxu1 %v951_v42 }
  0x47   : > { %1051 = vmatprep.subr.mxu1 %v1193_v20 }
  0x48   : > { %1052 = vmatpush3.msra.mxu1 %v950_v43 }
  0x49   : > { %1054 = vmatmul.mubr.msk.f32.vlgmr.msra.gmra.mxu1 %vm367_vm2, %v361_v31 }
  0xa7   : > { %v689_v54 = vpop.permute.xlu0 %688 }
  0xf5   : > { %v441_v44 = vpop.f32.mrf.mxu1 }
  0xf7   : > { %v1016_v45 = vpop.f32.mrf.mxu1 }
  0xf8   : > { %v599_v46 = vpop.f32.mrf.mxu0 }
  0xfa   : > { %v1042_v47 = vpop.f32.mrf.mxu0 }
  0xff   : > { %v520_v48 = vpop.f32.mrf.mxu1 }
 0x100   : > { %v682_v51 = vmax.f32 %v441_v44, %v520_v48 }
 0x101   : > { %v1029_v49 = vpop.f32.mrf.mxu1 }
 0x109   : > { %v678_v50 = vpop.f32.mrf.mxu1 }
 0x10a   : > { %v683_v52 = vmax.f32 %v599_v46, %v678_v50 }
 0x10b   : > { %v1055_v53 = vpop.f32.mrf.mxu1 }
 0x10c   : > { %v684_v55 = vmax.f32 %v682_v51, %v683_v52 }
 0x10e   : > { %v691_v56 = vadd.f32 %v689_v54, %v684_v55 }
 0x110   : > { %v692_v57 = vmax.f32 %v691_v56, 0.0 }
 0x112   : > { %748 = vrot.lane.b32.xlu1 %v692_v57, %s1196_s29  ;;  %757 = vrot.lane.b32.xlu0 %v692_v57, %s1197_s9  ;;  %s933_s29 = sshll.u32 %s1341_s16, 3  ;;  %s967_s9 = sshll.u32 %s927_s25, 7 }
 0x113   : > { %s1137_s25 = scalar_lea.vmem %s1136_s19, 256 }
 0x116   : > { %739 = vrot.lane.b32.xlu1 %v692_v57, %s1198_s10  ;;  %730 = vrot.lane.b32.xlu0 %v692_v57, %s1199_s11  ;;  %s360_s10 = scalar_lea.vmem [#allocation3], %s933_s29 }
 0x117   : > { %s863_s11 = sshll.u32 %s360_s10, 4  ;;  %s864_s11 = int_to_ptr.vmem [resolvable:$true] %s863_s11 }
 0x118   : > { %s1131_s17 = scalar_lea.vmem %s864_s11, 128  ;;  %p1138_p2 = scmp.lt.s32.totalorder %s864_s11, %s1136_s19 }
 0x119   : > { %p1132_p13 = scmp.ne.s32.totalorder %s864_s11, %s1131_s17  ;;  %p1139_p3 = scmp.lt.s32.totalorder %s1137_s25, %s1131_s17 }
 0x11a   : > { %721 = vrot.lane.b32.xlu1 %v692_v57, %s1200_s12  ;;  %712 = vrot.lane.b32.xlu0 %v692_v57, %s1201_s13 }
 0x11b   : > { %p1133_p0 = pnand %p1132_p13, %p1278_p6  ;;  %p1140_p4 = por %p1139_p3, %p1138_p2 }
 0x11d   : > { %p1134_p1 = pneg %p1133_p0 }
 0x11e   : > { %703 = vrot.lane.b32.xlu1 %v692_v57, %s1202_s14  ;;  %694 = vrot.lane.b32.xlu0 %v692_v57, %s1203_s15  ;;  %s861_s14 = scalar_lea.hbm %s1492_s6, %s967_s9  ;;  %s850_s15 = scalar_lea.sflag [#allocation4], %s1341_s16 }
 0x11f   : > { %p1141_p5 = pnand %p1140_p4, %p1134_p1 }
 0x122   : > { %770 = vperm.xlu1 %1130, %v767_v58  }
 0x184   : > { %v749_v61 = vpop.permute.xlu1 %748  ;;  %v758_v62 = vpop.permute.xlu0 %757 }
 0x185   : > { %v765_v63 = vmul.f32 %v964_v59, %v758_v62  ;;  %v756_v1 = vmul.f32 %v963_v60, %v749_v61 }
 0x187   : > { %1057 = vmatpush3.msra.mxu0 %v765_v63 }
 0x188   : > { %v740_v2 = vpop.permute.xlu1 %739  ;;  %1058 = vmatprep.subr.mxu0 %v1193_v20  ;;  %v731_v4 = vpop.permute.xlu0 %730 }
 0x189   : > { %v747_v5 = vmul.f32 %v962_v0, %v740_v2  ;;  %1059 = vmatpush3.msra.mxu0 %v756_v1  ;;  %v738_v6 = vmul.f32 %v961_v3, %v731_v4 }
 0x18a   : > { %1060 = vmatprep.subr.mxu0 %v1193_v20 }
 0x18b   : > { %1061 = vmatpush3.msra.mxu0 %v747_v5 }
 0x18c   : > { %v722_v8 = vpop.permute.xlu1 %721  ;;  %1062 = vmatprep.subr.mxu0 %v1193_v20  ;;  %v713_v9 = vpop.permute.xlu0 %712 }
 0x18d   : > { %1063 = vmatpush3.msra.mxu0 %v738_v6  ;;  %v729_v11 = vmul.f32 %v960_v7, %v722_v8  ;;  %v720_v14 = vmul.f32 %v959_v10, %v713_v9 }
 0x18e   : > { %1064 = vmatprep.subr.mxu0 %v1193_v20 }
 0x18f   : > { %1065 = vmatpush3.msra.mxu0 %v692_v57 }
 0x190   : > { %v704_v13 = vpop.permute.xlu1 %703  ;;  %1066 = vmatprep.subr.mxu0 %v1193_v20  ;;  %v695_v16 = vpop.permute.xlu0 %694 }
 0x191   : > { %1067 = vmatpush3.msra.mxu0 %v729_v11  ;;  %v711_v17 = vmul.f32 %v958_v12, %v704_v13  ;;  %v702_v18 = vmul.f32 %v957_v15, %v695_v16 }
 0x192   : > { %1068 = vmatprep.subr.mxu0 %v1193_v20 }
 0x193   : > { %1069 = vmatpush3.msra.mxu0 %v720_v14 }
 0x194   : > { %1070 = vmatprep.subr.mxu0 %v1193_v20 }
 0x195   : > { %1071 = vmatpush3.msra.mxu0 %v711_v17 }
 0x196   : > { %1072 = vmatprep.subr.mxu0 %v1193_v20 }
 0x197   : > { %1073 = vmatpush3.msra.mxu0 %v702_v18 }
 0x198   : > { %1075 = vmatmul.mubr.msk.f32.vlgmr.msra.gmra.mxu0 %vm773_vm3, %v766_v19 }
 0x19d   : > { %v771_v21 = vpop.permute.xlu1 %770 }
 0x258   : > { %v843_v22 = vpop.f32.mrf.mxu0 }
 0x259   : > { %v844_v23 = vadd.f32 %v843_v22, %v771_v21 }
 0x25a   : > { %v1076_v24 = vpop.f32.mrf.mxu0 }
 0x25b   : > { %v847_v25 = vmax.f32 %v844_v23, 0.0 }
 0x25d   : > { %848 = vst [vmem:[%s360_s10] sm:$0xff] %v847_v25 }
 0x25e   : > { %1144 = shalt.err (!%p1141_p5)
}
 0x25f   : > { %s1145_s20 = scalar_lea.hbm %s861_s14, 128  ;;  %s1149_s28 = scalar_lea.hbm %s1492_s6, 256 }
 0x260   : > { %p1146_p7 = scmp.ne.s32.totalorder %s861_s14, %s1145_s20  ;;  %p1150_p12 = scmp.lt.s32.totalorder %s861_s14, %s1492_s6 }
 0x261   : > { %p1151_p13 = scmp.lt.s32.totalorder %s1149_s28, %s1145_s20 }
 0x262   : > { %p1147_p10 = pnand %p1146_p7, %p1278_p6 }
 0x263   : > { %p1152_p0 = por %p1151_p13, %p1150_p12 }
 0x264   : > { %p1148_p11 = pneg %p1147_p10 }
 0x266   : > { %p1153_p9 = pnand %p1152_p0, %p1148_p11 }
 0x268   : > { %1156 = shalt.err (!%p1153_p9)
}
 0x269   : > { %1079 = dma.vmem_to_hbm [thread:$0]  (%p1278_p6), %s864_s11, 128, %s861_s14, %s850_s15  }
 0x26a PF: > { %s875_s10 = sand.u32 1, %s1179_s21   ;;  %p1496_p1 = scmp.ge.s32.totalorder %s1191_s24, 2 }
 0x26b   : > { %s876_s12 = scalar_lea.sflag [#allocation4], %s875_s10 }
 0x26c   : > { %p1082_p2 = pnand %p1496_p1, %p1282_p8 }
 0x26e   : > { %p1083_p3 = pneg %p1082_p2 }
 0x270   : > { %1174 = dma.done.wait (%p1083_p3), %s876_s12, 128  }
 0x271   : > { %1176 = vsyncadd (%p1083_p3), %s876_s12, 4294967168  ;;  %p16_p9 = scmp.ge.s32.totalorder %s1263_s27, 4   ;;  %s1497_s21 = smov %s1183_s22 }
 0x272   : > { %s1498_s22 = smov %s1187_s23  ;;  %s1499_s23 = smov %s1276_s30 }
 0x273   : > { %s1500_s24 = smov %s1263_s27  ;;  %18 = sbr.rel (!%p16_p9) target bundleno = 3 (0x3), region = 125 }
 0x278   :  { %881 = vsyncpa [#allocation4], 1 }
 0x279   :  { %883 = vsyncpa [#allocation4 + $0x1], 1 }

</bundles_post_ra>
